<compile_context>
chip_gen: v6e
topology: v6e:2x2x1
jax: 0.10.0
libtpu: 0.0.40
codegen_flags: <defaults>
</compile_context>

<pallas_src>
import numpy as np
import jax
import jax.numpy as jnp
from jax import lax
from jax.experimental import pallas as pl
from jax.experimental.pallas import tpu as pltpu


def _make_kernel(B, H, S1, L):
    """Build the single-step StackLSTMCell kernel for static shapes."""
    LH = L * H

    def kernel(pos_ref, op_ref, x_ref, h_stack_ref, c_stack_ref, *rest):
        w_refs = rest[:2 * L]                       # [W_0, b_0, W_1, b_1, ...]
        h_out_ref, c_out_ref, new_h_ref, new_c_ref = rest[2 * L:]

        pos3 = pos_ref[...][None]                   # (1, B, 1) int32
        op3 = op_ref[...][None]                     # (1, B, 1) int32
        iota3 = lax.broadcasted_iota(jnp.int32, (S1, B, 1), 0)

        h_stack = h_stack_ref[...]                  # (S1, B, LH)
        c_stack = c_stack_ref[...]

        # ---- vectorized gather of (hidden, cell) at pos, all batches at once ----
        gmask = iota3 == pos3                       # (S1, B, 1) -> broadcasts over LH lanes
        cur_h = jnp.sum(jnp.where(gmask, h_stack, 0.0), axis=0)   # (B, LH)
        cur_c = jnp.sum(jnp.where(gmask, c_stack, 0.0), axis=0)   # (B, LH)

        # ---- multi-layer LSTM cell: fused [x, h] @ [W_ih; W_hh], gate order (i,f,o,g) ----
        inp = x_ref[...]                            # (B, IN)
        next_h, next_c = [], []
        for l in range(L):
            W = w_refs[2 * l][...]                  # (in_l + H, 4H)
            bias = w_refs[2 * l + 1][...]           # (1, 4H)
            h_l = cur_h[:, l * H:(l + 1) * H]       # (B, H)
            c_l = cur_c[:, l * H:(l + 1) * H]
            xin = jnp.concatenate([inp, h_l], axis=1)
            gates = jnp.dot(xin, W, preferred_element_type=jnp.float32) + bias
            sig = jax.nn.sigmoid(gates[:, :3 * H])  # i, f, o in one contiguous block
            g_g = jnp.tanh(gates[:, 3 * H:])
            i_g = sig[:, :H]
            f_g = sig[:, H:2 * H]
            o_g = sig[:, 2 * H:3 * H]
            c_new = f_g * c_l + i_g * g_g
            h_new = o_g * jnp.tanh(c_new)
            next_h.append(h_new)
            next_c.append(c_new)
            inp = h_new
        next_h_all = jnp.concatenate(next_h, axis=1)   # (B, LH)
        next_c_all = jnp.concatenate(next_c, axis=1)

        # ---- vectorized push at pos+1 (stacks aliased in/out -> in-place in HBM) ----
        pmask = iota3 == (pos3 + 1)                 # (S1, B, 1)
        new_h = jnp.where(pmask, next_h_all[None], h_stack)
        new_c = jnp.where(pmask, next_c_all[None], c_stack)
        new_h_ref[...] = new_h
        new_c_ref[...] = new_c

        # ---- vectorized read of the return value at pos+op (last layer slice only) ----
        rmask = iota3 == (pos3 + op3)               # (S1, B, 1)
        lh0 = (L - 1) * H
        h_out_ref[...] = jnp.sum(jnp.where(rmask, new_h[:, :, lh0:], 0.0), axis=0)
        c_out_ref[...] = jnp.sum(jnp.where(rmask, new_c[:, :, lh0:], 0.0), axis=0)

    return kernel


def stack_lstm_step(x, op, pos, h_stack, c_stack, kernel_weights):
    """One StackLSTMCell.forward step.

    Returns (h, c), (new_pos, new_h_stack, new_c_stack).
    h_stack / c_stack are donated & aliased: updated in place in HBM.
    """
    S1, B, LH = h_stack.shape
    L = len(kernel_weights) // 2
    H = kernel_weights[1].shape[1] // 4
    assert LH == L * H
    kernel = _make_kernel(B, H, S1, L)

    pos_col = pos.reshape(B, 1).astype(jnp.int32)
    op_col = op.reshape(B, 1).astype(jnp.int32)

    out_shape = (
        jax.ShapeDtypeStruct((B, H), jnp.float32),
        jax.ShapeDtypeStruct((B, H), jnp.float32),
        jax.ShapeDtypeStruct((S1, B, LH), jnp.float32),
        jax.ShapeDtypeStruct((S1, B, LH), jnp.float32),
    )
    vmem = pl.BlockSpec(memory_space=pltpu.MemorySpace.VMEM)
    n_in = 5 + len(kernel_weights)

    h_out, c_out, new_h, new_c = pl.pallas_call(
        kernel,
        out_shape=out_shape,
        in_specs=[vmem] * n_in,
        out_specs=(vmem, vmem, vmem, vmem),
        # h_stack (operand 3) -> new_h (output 2), c_stack (operand 4) -> new_c (output 3)
        input_output_aliases={3: 2, 4: 3},
    )(pos_col, op_col, x, h_stack, c_stack, *kernel_weights)

    new_pos = pos + op  # glue: trivial scalar-vector update kept in plain JAX
    return (h_out, c_out), (new_pos, new_h, new_c)


# ------------------------- parameter / state setup (glue) -------------------------

def init_params(key, input_size, hidden_size, num_layers):
    """torch.nn.LSTMCell-style params; returns reference weights (i,f,g,o order)."""
    H = hidden_size
    k = 1.0 / np.sqrt(H)
    weights = []
    for l in range(num_layers):
        in_l = input_size if l == 0 else H
        key, k1, k2, k3, k4 = jax.random.split(key, 5)
        W_ih = jax.random.uniform(k1, (4 * H, in_l), jnp.float32, -k, k)
        W_hh = jax.random.uniform(k2, (4 * H, H), jnp.float32, -k, k)
        b_ih = jax.random.uniform(k3, (4 * H,), jnp.float32, -k, k)
        b_hh = jax.random.uniform(k4, (4 * H,), jnp.float32, -k, k)
        weights.append((W_ih.T, W_hh.T, (b_ih + b_hh)[None, :]))
    key, kh, kc = jax.random.split(key, 3)
    init_hidden = jax.random.uniform(kh, (H,), jnp.float32)   # torch.rand((hidden_size,))
    init_cell = jax.random.uniform(kc, (H,), jnp.float32)
    return weights, init_hidden, init_cell


def prepare_kernel_weights(weights):
    """Fuse [W_ih; W_hh] and permute gate columns (i,f,g,o) -> (i,f,o,g)."""
    kernel_weights = []
    for (W_ih_T, W_hh_T, bias) in weights:
        H = W_hh_T.shape[0]
        perm = np.concatenate([np.arange(0, 2 * H),
                               np.arange(3 * H, 4 * H),
                               np.arange(2 * H, 3 * H)])
        W = jnp.concatenate([W_ih_T, W_hh_T], axis=0)   # (in_l + H, 4H)
        kernel_weights.append(W[:, perm])
        kernel_weights.append(bias[:, perm])
    return kernel_weights


def build_stack(batch_size, stack_size, hidden_size, num_layers, init_hidden, init_cell):
    S1 = stack_size + 1
    LH = num_layers * hidden_size
    h_stack = jnp.zeros((S1, batch_size, LH), jnp.float32)
    c_stack = jnp.zeros((S1, batch_size, LH), jnp.float32)
    h_stack = h_stack.at[0].set(jnp.tile(init_hidden, num_layers))
    c_stack = c_stack.at[0].set(jnp.tile(init_cell, num_layers))
    pos = jnp.zeros((batch_size,), jnp.int32)
    return pos, h_stack, c_stack


# ------------------------- pure-JAX reference (for checking) -------------------------

def reference_step(x, op, pos, h_stack, c_stack, weights):
    B = x.shape[0]
    L = len(weights)
    H = weights[0][1].shape[0]
    bidx = jnp.arange(B)
    cur_h = h_stack[pos, bidx]   # (B, LH)
    cur_c = c_stack[pos, bidx]
    inp = x
    nh, nc = [], []
    for l in range(L):
        W_ih, W_hh, b = weights[l]
        h_l = cur_h[:, l * H:(l + 1) * H]
        c_l = cur_c[:, l * H:(l + 1) * H]
        gates = inp @ W_ih + h_l @ W_hh + b
        i = jax.nn.sigmoid(gates[:, :H])
        f = jax.nn.sigmoid(gates[:, H:2 * H])
        g = jnp.tanh(gates[:, 2 * H:3 * H])
        o = jax.nn.sigmoid(gates[:, 3 * H:])
        c_new = f * c_l + i * g
        h_new = o * jnp.tanh(c_new)
        nh.append(h_new)
        nc.append(c_new)
        inp = h_new
    next_h = jnp.concatenate(nh, axis=1)
    next_c = jnp.concatenate(nc, axis=1)
    h_stack = h_stack.at[pos + 1, bidx].set(next_h)
    c_stack = c_stack.at[pos + 1, bidx].set(next_c)
    new_pos = pos + op
    h_ret = h_stack[new_pos, bidx][:, (L - 1) * H:]
    c_ret = c_stack[new_pos, bidx][:, (L - 1) * H:]
    return (h_ret, c_ret), (new_pos, h_stack, c_stack)


if __name__ == "__main__":
    B, IN, H, S, L = 8, 16, 32, 8, 2   # batch, input_size, hidden_size, stack_size, num_layers

    key = jax.random.PRNGKey(0)
    key, kp = jax.random.split(key)
    weights, init_hidden, init_cell = init_params(kp, IN, H, L)
    kernel_weights = prepare_kernel_weights(weights)

    pos, h_stack, c_stack = build_stack(B, S, H, L, init_hidden, init_cell)
    # Independent copies for the reference (the kernel's stacks are donated in place).
    r_pos, r_h_stack, r_c_stack = pos, h_stack.copy(), c_stack.copy()

    ops = [
        jnp.array([1, 1, 0, 1, 1, 0, 1, 1], jnp.int32),
        jnp.array([1, 0, 1, -1, 1, 1, 0, 1], jnp.int32),
        jnp.array([-1, 1, 1, 1, 0, -1, 1, 0], jnp.int32),
    ]

    step = jax.jit(stack_lstm_step, donate_argnums=(3, 4))

    h_out = c_out = None
    for op in ops:
        key, kx = jax.random.split(key)
        x = jax.random.normal(kx, (B, IN), jnp.float32)
        (h_out, c_out), (pos, h_stack, c_stack) = step(
            x, op, pos, h_stack, c_stack, kernel_weights)
        (rh, rc), (r_pos, r_h_stack, r_c_stack) = reference_step(
            x, op, r_pos, r_h_stack, r_c_stack, weights)
        np.testing.assert_allclose(np.asarray(h_out), np.asarray(rh), atol=5e-3, rtol=5e-3)
        np.testing.assert_allclose(np.asarray(c_out), np.asarray(rc), atol=5e-3, rtol=5e-3)
        np.testing.assert_allclose(np.asarray(pos), np.asarray(r_pos))
        np.testing.assert_allclose(np.asarray(h_stack), np.asarray(r_h_stack), atol=5e-3, rtol=5e-3)
        np.testing.assert_allclose(np.asarray(c_stack), np.asarray(r_c_stack), atol=5e-3, rtol=5e-3)

    jax.block_until_ready((h_out, c_out, h_stack, c_stack))
    print("KERNEL_OK")
</pallas_src>

<mosaic_0001>
module attributes {stable_mosaic.version = 11 : i64} {
  func.func @kernel(%arg0: memref<8x1xi32, #tpu.memory_space<vmem>>, %arg1: memref<8x1xi32, #tpu.memory_space<vmem>>, %arg2: memref<8x16xf32, #tpu.memory_space<vmem>>, %arg3: memref<9x8x64xf32, #tpu.memory_space<vmem>>, %arg4: memref<9x8x64xf32, #tpu.memory_space<vmem>>, %arg5: memref<48x128xf32, #tpu.memory_space<vmem>>, %arg6: memref<1x128xf32, #tpu.memory_space<vmem>>, %arg7: memref<64x128xf32, #tpu.memory_space<vmem>>, %arg8: memref<1x128xf32, #tpu.memory_space<vmem>>, %arg9: memref<8x32xf32, #tpu.memory_space<vmem>>, %arg10: memref<8x32xf32, #tpu.memory_space<vmem>>, %arg11: memref<9x8x64xf32, #tpu.memory_space<vmem>>, %arg12: memref<9x8x64xf32, #tpu.memory_space<vmem>>) attributes {dimension_semantics = [], scalar_prefetch = 0 : i64, scratch_operands = 0 : i64, tpu.core_type = #tpu.core_type<tc>} {
    %c0 = arith.constant 0 : index
    %c0_0 = arith.constant 0 : index
    %0 = vector.load %arg0[%c0, %c0_0] : memref<8x1xi32, #tpu.memory_space<vmem>>, vector<8x1xi32>
    %1 = vector.shape_cast %0 : vector<8x1xi32> to vector<1x8x1xi32>
    %c0_1 = arith.constant 0 : index
    %c0_2 = arith.constant 0 : index
    %2 = vector.load %arg1[%c0_1, %c0_2] : memref<8x1xi32, #tpu.memory_space<vmem>>, vector<8x1xi32>
    %3 = vector.shape_cast %2 : vector<8x1xi32> to vector<1x8x1xi32>
    %4 = tpu.iota {dimensions = array<i32: 0>} : vector<9x8x1xi32>
    %c0_3 = arith.constant 0 : index
    %c0_4 = arith.constant 0 : index
    %c0_5 = arith.constant 0 : index
    %5 = vector.load %arg3[%c0_3, %c0_4, %c0_5] : memref<9x8x64xf32, #tpu.memory_space<vmem>>, vector<9x8x64xf32>
    %c0_6 = arith.constant 0 : index
    %c0_7 = arith.constant 0 : index
    %c0_8 = arith.constant 0 : index
    %6 = vector.load %arg4[%c0_6, %c0_7, %c0_8] : memref<9x8x64xf32, #tpu.memory_space<vmem>>, vector<9x8x64xf32>
    %7 = vector.broadcast %1 : vector<1x8x1xi32> to vector<9x8x1xi32>
    %8 = arith.cmpi eq, %4, %7 : vector<9x8x1xi32>
    %cst = arith.constant 0.000000e+00 : f32
    %9 = vector.shape_cast %8 : vector<9x8x1xi1> to vector<9x8x1xi1>
    %10 = vector.broadcast %9 : vector<9x8x1xi1> to vector<9x8x64xi1>
    %11 = vector.broadcast %cst : f32 to vector<9x8x64xf32>
    %12 = arith.select %10, %5, %11 : vector<9x8x64xi1>, vector<9x8x64xf32>
    %cst_9 = arith.constant dense<0.000000e+00> : vector<8x64xf32>
    %13 = vector.multi_reduction <add>, %12, %cst_9 [0] : vector<9x8x64xf32> to vector<8x64xf32>
    %cst_10 = arith.constant 0.000000e+00 : f32
    %14 = vector.shape_cast %8 : vector<9x8x1xi1> to vector<9x8x1xi1>
    %15 = vector.broadcast %14 : vector<9x8x1xi1> to vector<9x8x64xi1>
    %16 = vector.broadcast %cst_10 : f32 to vector<9x8x64xf32>
    %17 = arith.select %15, %6, %16 : vector<9x8x64xi1>, vector<9x8x64xf32>
    %cst_11 = arith.constant dense<0.000000e+00> : vector<8x64xf32>
    %18 = vector.multi_reduction <add>, %17, %cst_11 [0] : vector<9x8x64xf32> to vector<8x64xf32>
    %c0_12 = arith.constant 0 : index
    %c0_13 = arith.constant 0 : index
    %19 = vector.load %arg2[%c0_12, %c0_13] : memref<8x16xf32, #tpu.memory_space<vmem>>, vector<8x16xf32>
    %c0_14 = arith.constant 0 : index
    %c0_15 = arith.constant 0 : index
    %20 = vector.load %arg5[%c0_14, %c0_15] : memref<48x128xf32, #tpu.memory_space<vmem>>, vector<48x128xf32>
    %c0_16 = arith.constant 0 : index
    %c0_17 = arith.constant 0 : index
    %21 = vector.load %arg6[%c0_16, %c0_17] : memref<1x128xf32, #tpu.memory_space<vmem>>, vector<1x128xf32>
    %22 = vector.extract_strided_slice %13 {offsets = [0, 0], sizes = [8, 32], strides = [1, 1]} : vector<8x64xf32> to vector<8x32xf32>
    %23 = vector.extract_strided_slice %18 {offsets = [0, 0], sizes = [8, 32], strides = [1, 1]} : vector<8x64xf32> to vector<8x32xf32>
    %24 = tpu.concatenate %19, %22 in 1 : vector<8x16xf32>, vector<8x32xf32> -> vector<8x48xf32>
    %cst_18 = arith.constant dense<0.000000e+00> : vector<8x128xf32>
    %25 = tpu.matmul %24, %20, %cst_18 {dimension_numbers = #tpu.dot_dimension_numbers<[1], [0], [0], [1], [0, 0, 1, 1], [], []>} : vector<8x48xf32>, vector<48x128xf32>, vector<8x128xf32> -> vector<8x128xf32>
    %26 = vector.broadcast %21 : vector<1x128xf32> to vector<8x128xf32>
    %27 = arith.addf %25, %26 : vector<8x128xf32>
    %28 = vector.extract_strided_slice %27 {offsets = [0, 0], sizes = [8, 96], strides = [1, 1]} : vector<8x128xf32> to vector<8x96xf32>
    %29 = arith.negf %28 : vector<8x96xf32>
    %30 = math.exp %29 : vector<8x96xf32>
    %cst_19 = arith.constant 1.000000e+00 : f32
    %31 = vector.broadcast %cst_19 : f32 to vector<8x96xf32>
    %32 = arith.addf %31, %30 : vector<8x96xf32>
    %33 = arith.divf %31, %32 : vector<8x96xf32>
    %34 = vector.extract_strided_slice %27 {offsets = [0, 96], sizes = [8, 32], strides = [1, 1]} : vector<8x128xf32> to vector<8x32xf32>
    %35 = math.tanh %34 : vector<8x32xf32>
    %36 = vector.extract_strided_slice %33 {offsets = [0, 0], sizes = [8, 32], strides = [1, 1]} : vector<8x96xf32> to vector<8x32xf32>
    %37 = vector.extract_strided_slice %33 {offsets = [0, 32], sizes = [8, 32], strides = [1, 1]} : vector<8x96xf32> to vector<8x32xf32>
    %38 = vector.extract_strided_slice %33 {offsets = [0, 64], sizes = [8, 32], strides = [1, 1]} : vector<8x96xf32> to vector<8x32xf32>
    %39 = arith.mulf %37, %23 : vector<8x32xf32>
    %40 = arith.mulf %36, %35 : vector<8x32xf32>
    %41 = arith.addf %39, %40 : vector<8x32xf32>
    %42 = math.tanh %41 : vector<8x32xf32>
    %43 = arith.mulf %38, %42 : vector<8x32xf32>
    %c0_20 = arith.constant 0 : index
    %c0_21 = arith.constant 0 : index
    %44 = vector.load %arg7[%c0_20, %c0_21] : memref<64x128xf32, #tpu.memory_space<vmem>>, vector<64x128xf32>
    %c0_22 = arith.constant 0 : index
    %c0_23 = arith.constant 0 : index
    %45 = vector.load %arg8[%c0_22, %c0_23] : memref<1x128xf32, #tpu.memory_space<vmem>>, vector<1x128xf32>
    %46 = vector.extract_strided_slice %13 {offsets = [0, 32], sizes = [8, 32], strides = [1, 1]} : vector<8x64xf32> to vector<8x32xf32>
    %47 = vector.extract_strided_slice %18 {offsets = [0, 32], sizes = [8, 32], strides = [1, 1]} : vector<8x64xf32> to vector<8x32xf32>
    %48 = tpu.concatenate %43, %46 in 1 : vector<8x32xf32>, vector<8x32xf32> -> vector<8x64xf32>
    %cst_24 = arith.constant dense<0.000000e+00> : vector<8x128xf32>
    %49 = tpu.matmul %48, %44, %cst_24 {dimension_numbers = #tpu.dot_dimension_numbers<[1], [0], [0], [1], [0, 0, 1, 1], [], []>} : vector<8x64xf32>, vector<64x128xf32>, vector<8x128xf32> -> vector<8x128xf32>
    %50 = vector.broadcast %45 : vector<1x128xf32> to vector<8x128xf32>
    %51 = arith.addf %49, %50 : vector<8x128xf32>
    %52 = vector.extract_strided_slice %51 {offsets = [0, 0], sizes = [8, 96], strides = [1, 1]} : vector<8x128xf32> to vector<8x96xf32>
    %53 = arith.negf %52 : vector<8x96xf32>
    %54 = math.exp %53 : vector<8x96xf32>
    %cst_25 = arith.constant 1.000000e+00 : f32
    %55 = vector.broadcast %cst_25 : f32 to vector<8x96xf32>
    %56 = arith.addf %55, %54 : vector<8x96xf32>
    %57 = arith.divf %55, %56 : vector<8x96xf32>
    %58 = vector.extract_strided_slice %51 {offsets = [0, 96], sizes = [8, 32], strides = [1, 1]} : vector<8x128xf32> to vector<8x32xf32>
    %59 = math.tanh %58 : vector<8x32xf32>
    %60 = vector.extract_strided_slice %57 {offsets = [0, 0], sizes = [8, 32], strides = [1, 1]} : vector<8x96xf32> to vector<8x32xf32>
    %61 = vector.extract_strided_slice %57 {offsets = [0, 32], sizes = [8, 32], strides = [1, 1]} : vector<8x96xf32> to vector<8x32xf32>
    %62 = vector.extract_strided_slice %57 {offsets = [0, 64], sizes = [8, 32], strides = [1, 1]} : vector<8x96xf32> to vector<8x32xf32>
    %63 = arith.mulf %61, %47 : vector<8x32xf32>
    %64 = arith.mulf %60, %59 : vector<8x32xf32>
    %65 = arith.addf %63, %64 : vector<8x32xf32>
    %66 = math.tanh %65 : vector<8x32xf32>
    %67 = arith.mulf %62, %66 : vector<8x32xf32>
    %68 = tpu.concatenate %43, %67 in 1 : vector<8x32xf32>, vector<8x32xf32> -> vector<8x64xf32>
    %69 = tpu.concatenate %41, %65 in 1 : vector<8x32xf32>, vector<8x32xf32> -> vector<8x64xf32>
    %c1_i32 = arith.constant 1 : i32
    %70 = vector.broadcast %c1_i32 : i32 to vector<1x8x1xi32>
    %71 = arith.addi %1, %70 : vector<1x8x1xi32>
    %72 = vector.broadcast %71 : vector<1x8x1xi32> to vector<9x8x1xi32>
    %73 = arith.cmpi eq, %4, %72 : vector<9x8x1xi32>
    %74 = vector.shape_cast %68 : vector<8x64xf32> to vector<1x8x64xf32>
    %75 = vector.shape_cast %73 : vector<9x8x1xi1> to vector<9x8x1xi1>
    %76 = vector.broadcast %75 : vector<9x8x1xi1> to vector<9x8x64xi1>
    %77 = vector.shape_cast %74 : vector<1x8x64xf32> to vector<1x8x64xf32>
    %78 = vector.broadcast %77 : vector<1x8x64xf32> to vector<9x8x64xf32>
    %79 = arith.select %76, %78, %5 : vector<9x8x64xi1>, vector<9x8x64xf32>
    %80 = vector.shape_cast %69 : vector<8x64xf32> to vector<1x8x64xf32>
    %81 = vector.shape_cast %73 : vector<9x8x1xi1> to vector<9x8x1xi1>
    %82 = vector.broadcast %81 : vector<9x8x1xi1> to vector<9x8x64xi1>
    %83 = vector.shape_cast %80 : vector<1x8x64xf32> to vector<1x8x64xf32>
    %84 = vector.broadcast %83 : vector<1x8x64xf32> to vector<9x8x64xf32>
    %85 = arith.select %82, %84, %6 : vector<9x8x64xi1>, vector<9x8x64xf32>
    %c0_26 = arith.constant 0 : index
    %c0_27 = arith.constant 0 : index
    %c0_28 = arith.constant 0 : index
    %86 = vector.load %arg11[%c0_26, %c0_27, %c0_28] : memref<9x8x64xf32, #tpu.memory_space<vmem>>, vector<9x8x64xf32>
    tpu.vector_store %arg11[%c0_26, %c0_27, %c0_28], %79 {strides = array<i32>} : memref<9x8x64xf32, #tpu.memory_space<vmem>>, vector<9x8x64xf32>,
    %c0_29 = arith.constant 0 : index
    %c0_30 = arith.constant 0 : index
    %c0_31 = arith.constant 0 : index
    %87 = vector.load %arg12[%c0_29, %c0_30, %c0_31] : memref<9x8x64xf32, #tpu.memory_space<vmem>>, vector<9x8x64xf32>
    tpu.vector_store %arg12[%c0_29, %c0_30, %c0_31], %85 {strides = array<i32>} : memref<9x8x64xf32, #tpu.memory_space<vmem>>, vector<9x8x64xf32>,
    %88 = arith.addi %1, %3 : vector<1x8x1xi32>
    %89 = vector.broadcast %88 : vector<1x8x1xi32> to vector<9x8x1xi32>
    %90 = arith.cmpi eq, %4, %89 : vector<9x8x1xi32>
    %91 = vector.extract_strided_slice %79 {offsets = [0, 0, 32], sizes = [9, 8, 32], strides = [1, 1, 1]} : vector<9x8x64xf32> to vector<9x8x32xf32>
    %cst_32 = arith.constant 0.000000e+00 : f32
    %92 = vector.shape_cast %90 : vector<9x8x1xi1> to vector<9x8x1xi1>
    %93 = vector.broadcast %92 : vector<9x8x1xi1> to vector<9x8x32xi1>
    %94 = vector.broadcast %cst_32 : f32 to vector<9x8x32xf32>
    %95 = arith.select %93, %91, %94 : vector<9x8x32xi1>, vector<9x8x32xf32>
    %cst_33 = arith.constant dense<0.000000e+00> : vector<8x32xf32>
    %96 = vector.multi_reduction <add>, %95, %cst_33 [0] : vector<9x8x32xf32> to vector<8x32xf32>
    %c0_34 = arith.constant 0 : index
    %c0_35 = arith.constant 0 : index
    %97 = vector.load %arg9[%c0_34, %c0_35] : memref<8x32xf32, #tpu.memory_space<vmem>>, vector<8x32xf32>
    tpu.vector_store %arg9[%c0_34, %c0_35], %96 {strides = array<i32>} : memref<8x32xf32, #tpu.memory_space<vmem>>, vector<8x32xf32>,
    %98 = vector.extract_strided_slice %85 {offsets = [0, 0, 32], sizes = [9, 8, 32], strides = [1, 1, 1]} : vector<9x8x64xf32> to vector<9x8x32xf32>
    %cst_36 = arith.constant 0.000000e+00 : f32
    %99 = vector.shape_cast %90 : vector<9x8x1xi1> to vector<9x8x1xi1>
    %100 = vector.broadcast %99 : vector<9x8x1xi1> to vector<9x8x32xi1>
    %101 = vector.broadcast %cst_36 : f32 to vector<9x8x32xf32>
    %102 = arith.select %100, %98, %101 : vector<9x8x32xi1>, vector<9x8x32xf32>
    %cst_37 = arith.constant dense<0.000000e+00> : vector<8x32xf32>
    %103 = vector.multi_reduction <add>, %102, %cst_37 [0] : vector<9x8x32xf32> to vector<8x32xf32>
    %c0_38 = arith.constant 0 : index
    %c0_39 = arith.constant 0 : index
    %104 = vector.load %arg10[%c0_38, %c0_39] : memref<8x32xf32, #tpu.memory_space<vmem>>, vector<8x32xf32>
    tpu.vector_store %arg10[%c0_38, %c0_39], %103 {strides = array<i32>} : memref<8x32xf32, #tpu.memory_space<vmem>>, vector<8x32xf32>,
    return
  }
}

</mosaic_0001>

<bundles_post_ra>
// kernel: stack_lstm_step.1
= control target key start
LH: loop header
LB: loop body
LE: loop exit
PB: predicated region body
PF: predicated region fallthrough
CT: control target
= control target key end

     0   :  { %18 = vsyncpa [#allocation3], 0  ;;  %s1478_s0 = inlined_call_operand.vmem [shape: s32[8,1], index: 0, kind: input, shape index: {}]   ;;  %s1479_s1 = inlined_call_operand.vmem [shape: s32[8,1], index: 1, kind: input, shape index: {}]   ;;  %s1480_s2 = inlined_call_operand.vmem [shape: f32[8,16], index: 2, kind: input, shape index: {}]   ;;  %s1481_s3 = inlined_call_operand.hbm [shape: f32[9,8,64], index: 3, kind: input, shape index: {}, may-alias: {3,11}]   ;;  %s1482_s4 = inlined_call_operand.hbm [shape: f32[9,8,64], index: 4, kind: input, shape index: {}, may-alias: {4,12}]   ;;  %s1483_s5 = inlined_call_operand.hbm [shape: f32[48,128], index: 5, kind: input, shape index: {}]   ;;  %s1484_s6 = inlined_call_operand.vmem [shape: f32[1,128], index: 6, kind: input, shape index: {}]   ;;  %s1485_s7 = inlined_call_operand.hbm [shape: f32[64,128], index: 7, kind: input, shape index: {}]   ;;  %s1486_s8 = inlined_call_operand.vmem [shape: f32[1,128], index: 8, kind: input, shape index: {}]   ;;  %s1487_s9 = inlined_call_operand.hbm [shape: f32[8,32], index: 9, kind: output, shape index: {0}]   ;;  %s1488_s10 = inlined_call_operand.hbm [shape: f32[8,32], index: 10, kind: output, shape index: {1}]   ;;  %s1489_s11 = inlined_call_operand.hbm [shape: f32[9,8,64], index: 11, kind: output, shape index: {2}, may-alias: {3,11}]   ;;  %s1490_s12 = inlined_call_operand.hbm [shape: f32[9,8,64], index: 12, kind: output, shape index: {3}, may-alias: {4,12}]  }
   0x1   :  { %19 = vsyncpa [#allocation6], 0 }
   0x2   :  { %20 = vsyncpa [#allocation9], 0 }
   0x3   :  { %21 = vsyncpa [#allocation4], 0 }
   0x4   :  { %22 = vsyncpa [#allocation12], 0 }
   0x5   :  { %23 = vsyncpa [#allocation15], 0  ;;  %s1005_s21 = smov [#allocation5]   ;;  %s1006_s23 = smov [#allocation2]  }
   0x6   :  { %s47_s22 = sshll.u32 %s1005_s21, 4  ;;  %s35_s24 = sshll.u32 %s1006_s23, 4  ;;  %s48_s22 = int_to_ptr.vmem [resolvable:$true] %s47_s22  ;;  %s36_s24 = int_to_ptr.vmem [resolvable:$true] %s35_s24 }
   0x7   :  { %s841_s25 = scalar_lea.vmem %s48_s22, 1152  ;;  %p846_p1 = scmp.lt.s32.totalorder %s48_s22, %s48_s22 }
   0x8   :  { %p842_p0 = scmp.ne.s32.totalorder %s48_s22, %s841_s25  ;;  %p847_p2 = scmp.lt.s32.totalorder %s841_s25, %s841_s25 }
   0xa   :  { %p848_p3 = por %p847_p2, %p846_p1 }
   0xc   :  { %p849_p4 = pnand %p848_p3, %p842_p0 }
   0xe   :  { %852 = shalt.err (!%p849_p4)
}
   0xf   :  { %s1007_s26 = smov 128   ;;  %s1008_s27 = smov 8  }
  0x10   :  { %53 = dma.hbm_to_vmem [thread:$0]  %s1482_s4, 1152, %s48_s22, [#allocation6], %s1007_s26, %s1007_s26, %s1008_s27  }
  0x11   :  { %s861_s30 = scalar_lea.vmem %s36_s24, 1152  ;;  %p866_p6 = scmp.lt.s32.totalorder %s36_s24, %s36_s24 }
  0x12   :  { %p862_p5 = scmp.ne.s32.totalorder %s36_s24, %s861_s30  ;;  %p867_p7 = scmp.lt.s32.totalorder %s861_s30, %s861_s30 }
  0x14   :  { %p868_p8 = por %p867_p7, %p866_p6 }
  0x16   :  { %p869_p9 = pnand %p868_p8, %p862_p5 }
  0x18   :  { %872 = shalt.err (!%p869_p9)
}
  0x19   :  { %41 = dma.hbm_to_vmem [thread:$0]  %s1481_s3, 1152, %s36_s24, [#allocation3], %s1007_s26, %s1007_s26, %s1008_s27  }
  0x1a   :  { %s1009_s15 = smov [#allocation7]   ;;  %s1010_s17 = smov [#allocation8]  }
  0x1b   :  { %s59_s16 = sshll.u32 %s1009_s15, 4  ;;  %s73_s18 = sshll.u32 %s1010_s17, 4  ;;  %s60_s16 = int_to_ptr.vmem [resolvable:$true] %s59_s16  ;;  %s74_s18 = int_to_ptr.vmem [resolvable:$true] %s73_s18 }
  0x1c   :  { %s881_s4 = scalar_lea.vmem %s60_s16, 768  ;;  %p886_p11 = scmp.lt.s32.totalorder %s60_s16, %s60_s16 }
  0x1d   :  { %p882_p10 = scmp.ne.s32.totalorder %s60_s16, %s881_s4  ;;  %p887_p12 = scmp.lt.s32.totalorder %s881_s4, %s881_s4 }
  0x1f   :  { %p888_p13 = por %p887_p12, %p886_p11 }
  0x21   :  { %p889_p0 = pnand %p888_p13, %p882_p10 }
  0x23   :  { %892 = shalt.err (!%p889_p0)
}
  0x24   :  { %65 = dma.hbm_to_vmem [thread:$0]  %s1483_s5, 768, %s60_s16, [#allocation6], %s1007_s26, %s1007_s26, %s1008_s27  }
  0x25   :  { %s901_s3 = scalar_lea.vmem %s74_s18, 1024  ;;  %p906_p2 = scmp.lt.s32.totalorder %s74_s18, %s74_s18 }
  0x26   :  { %p902_p1 = scmp.ne.s32.totalorder %s74_s18, %s901_s3  ;;  %p907_p3 = scmp.lt.s32.totalorder %s901_s3, %s901_s3 }
  0x28   :  { %p908_p4 = por %p907_p3, %p906_p2 }
  0x2a   :  { %p909_p5 = pnand %p908_p4, %p902_p1 }
  0x2c   :  { %912 = shalt.err (!%p909_p5)
}
  0x2d   :  { %79 = dma.hbm_to_vmem [thread:$0]  %s1485_s7, 1024, %s74_s18, [#allocation9], %s1007_s26, %s1007_s26, %s1008_s27  }
  0x2e   :  { %993 = dma.done.wait [#allocation3], 1152  }
  0x2f   :  { %994 = vsyncadd [#allocation3], 4294966144 }
  0x30   :  { %995 = dma.done.wait [#allocation6], 1920  }
  0x31   :  { %996 = vsyncadd [#allocation6], 4294965376 }
  0x32   :  { %997 = dma.done.wait [#allocation9], 1024  }
  0x33   :  { %998 = vsyncadd [#allocation9], 4294966272  ;;  %v1011_v0 = vmov 0   ;;  %v1116_v1 = vld [vmem:[%s1478_s0] sm:$0xff]  ;;  %v227_v11 = vld [vmem:[#allocation7 + $0x28] sm:$0xff]  ;;  %v1012_v12 = vmov 0.0  }
  0x34   :  { %816 = vset.pattern.permute.xlu1 %v1011_v0  ;;  %815 = vset.pattern.permute.xlu0 %v1011_v0  ;;  %vm116_vm0 = vcmp.eq.s32.totalorder %v1116_v1, 2  ;;  %vm114_vm1 = vcmp.eq.s32.totalorder %v1116_v1, 0  ;;  %vm117_vm2 = vcmp.eq.s32.totalorder %v1116_v1, 3  ;;  %vm115_vm3 = vcmp.eq.s32.totalorder %v1116_v1, 1  ;;  %v226_v13 = vld [vmem:[#allocation7 + $0x20] sm:$0xff]  ;;  %v225_v14 = vld [vmem:[#allocation7 + $0x18] sm:$0xff] }
  0x35   :  { %v125_v2 = vsel %vm116_vm0, 1, %v1011_v0  ;;  %v123_v3 = vsel %vm114_vm1, 1, %v1011_v0  ;;  %v126_v4 = vsel %vm117_vm2, 1, %v1011_v0  ;;  %v124_v5 = vsel %vm115_vm3, 1, %v1011_v0  ;;  %764 = vmatprep.subr.mxu0 %v1012_v12  ;;  %779 = vmatprep.subr.mxu1 %v1012_v12  ;;  %v224_v15 = vld [vmem:[#allocation7 + $0x10] sm:$0xff]  ;;  %v223_v16 = vld [vmem:[#allocation7 + $0x8] sm:$0xff] }
  0x36   :  { %139 = vperm.xlu1 %816, %v125_v2   ;;  %133 = vperm.xlu0 %815, %v123_v3   ;;  %vm119_vm4 = vcmp.eq.s32.totalorder %v1116_v1, 5  ;;  %vm118_vm5 = vcmp.eq.s32.totalorder %v1116_v1, 4  ;;  %vm121_vm6 = vcmp.eq.s32.totalorder %v1116_v1, 7  ;;  %vm120_vm7 = vcmp.eq.s32.totalorder %v1116_v1, 6  ;;  %v1143_v18 = vld [vmem:[#allocation2] sm:$0xff]  ;;  %v1145_v20 = vld [vmem:[#allocation5] sm:$0xff] }
  0x37   :  { %v128_v6 = vsel %vm119_vm4, 1, %v1011_v0  ;;  %v127_v7 = vsel %vm118_vm5, 1, %v1011_v0  ;;  %v130_v8 = vsel %vm121_vm6, 1, %v1011_v0  ;;  %v129_v9 = vsel %vm120_vm7, 1, %v1011_v0  ;;  %765 = vmatpush3.msra.mxu0 %v227_v11  ;;  %v1147_v21 = vld [vmem:[#allocation2 + $0x10] sm:$0xff]  ;;  %v1149_v22 = vld [vmem:[#allocation5 + $0x10] sm:$0xff] }
  0x38   :  { %vm122_vm8 = vcmp.eq.s32.totalorder %v1116_v1, 8  ;;  %766 = vmatprep.subr.mxu0 %v1012_v12  ;;  %vm177_vm11 = vcmask 523264   ;;  %v1152_v24 = vld [vmem:[#allocation2 + $0x8] sm:$0xff]  ;;  %v1154_v25 = vld [vmem:[#allocation5 + $0x8] sm:$0xff]  ;;  %v1157_v27 = vld [vmem:[#allocation2 + $0x18] sm:$0xff]  ;;  %vm1013_vm2 = vmmov 0  }
  0x39   :  { %v131_v10 = vsel %vm122_vm8, 1, %v1011_v0  ;;  %767 = vmatpush3.msra.mxu0 %v226_v13  ;;  %v1160_v31 = vld [vmem:[#allocation5 + $0x18] sm:$0xff]  ;;  %v1171_v43 = vld [vmem:[#allocation2 + $0x28] sm:$0xff]  ;;  %v1179_v50 = vld [vmem:[#allocation5 + $0x28] sm:$0xff]  ;;  %776 = vmatprep.mubr.msk.f32.mxu0 %vm1013_vm2, %v1012_v12  ;;  %s1014_s0 = smov 16   ;;  %s1015_s7 = smov 32  }
  0x3a   :  { %142 = vperm.xlu1 %816, %v126_v4   ;;  %136 = vperm.xlu0 %815, %v124_v5   ;;  %v1173_v45 = vld [vmem:[#allocation2 + $0x20] sm:$0xff]  ;;  %v1175_v46 = vld [vmem:[#allocation5 + $0x20] sm:$0xff]  ;;  %v222_v58 = vld [vmem:[#allocation7] sm:$0xff]  ;;  %vm233_vm4 = vcmask 130048   ;;  %vm241_vm5 = vcmask 392192   ;;  %vm356_vm6 = vcmask 261120  }
  0x3b   :  { %768 = vmatprep.subr.mxu0 %v1012_v12  ;;  %v1188_v2 = vld [vmem:[#allocation2 + $0x30] sm:$0xff]  ;;  %v1190_v3 = vld [vmem:[#allocation5 + $0x30] sm:$0xff]  ;;  %795 = vmatprep.mubr.msk.f32.mxu1 %vm1013_vm2, %v1012_v12  ;;  %v1199_v11 = vld [vmem:[#allocation5 + $0x38] sm:$0xff] }
  0x3c   :  { %769 = vmatpush3.msra.mxu0 %v225_v14 }
  0x3d   :  { %770 = vmatprep.subr.mxu0 %v1012_v12 }
  0x3e   :  { %148 = vperm.xlu1 %816, %v128_v6   ;;  %145 = vperm.xlu0 %815, %v127_v7   ;;  %v1193_v6 = vld [vmem:[#allocation2 + $0x38] sm:$0xff] }
  0x3f   :  { %771 = vmatpush3.msra.mxu0 %v224_v15  ;;  %v1203_v15 = vld [vmem:[#allocation2 + $0x40] sm:$0xff] }
  0x40   :  { %772 = vmatprep.subr.mxu0 %v1012_v12 }
  0x41   :  { %773 = vmatpush3.msra.mxu0 %v223_v16 }
  0x42   :  { %154 = vperm.xlu1 %816, %v130_v8   ;;  %151 = vperm.xlu0 %815, %v129_v9  }
  0x43   :  { %774 = vmatprep.subr.mxu0 %v1012_v12 }
  0x44   :  { %775 = vmatpush3.msra.mxu0 %v222_v58 }
  0x46   :  { %157 = vperm.xlu0 %815, %v131_v10  }
  0xb1   :  { %v140_v17 = vpop.permute.xlu1 %139  ;;  %v134_v19 = vpop.permute.xlu0 %133 }
  0xb2   :  { %vm159_vm9 = vcmp.eq.s32.totalorder %v134_v19, 1  ;;  %vm161_vm10 = vcmp.eq.s32.totalorder %v140_v17, 1 }
  0xb3   :  { %v168_v23 = vsel %vm159_vm9, %v1143_v18, 0.0  ;;  %v195_v26 = vsel %vm159_vm9, %v1145_v20, 0.0  ;;  %v170_v30 = vsel %vm161_vm10, %v1147_v21, 0.0  ;;  %v197_v32 = vsel %vm161_vm10, %v1149_v22, 0.0 }
  0xb4   :  { %v178_v33 = vsel %vm177_vm11, %v168_v23, 0.0  ;;  %v204_v36 = vsel %vm177_vm11, %v195_v26, 0.0  ;;  %v181_v48 = vsel %vm177_vm11, %v170_v30, 0.0  ;;  %v207_v49 = vsel %vm177_vm11, %v197_v32, 0.0 }
  0xb5   :  { %v143_v28 = vpop.permute.xlu1 %142  ;;  %v137_v29 = vpop.permute.xlu0 %136 }
  0xb6   :  { %vm162_vm12 = vcmp.eq.s32.totalorder %v143_v28, 1  ;;  %vm160_vm13 = vcmp.eq.s32.totalorder %v137_v29, 1 }
  0xb7   :  { %v169_v34 = vsel %vm160_vm13, %v1152_v24, 0.0  ;;  %v196_v35 = vsel %vm160_vm13, %v1154_v25, 0.0  ;;  %v171_v37 = vsel %vm162_vm12, %v1157_v27, 0.0  ;;  %v198_v40 = vsel %vm162_vm12, %v1160_v31, 0.0 }
  0xb8   :  { %v179_v38 = vsel %vm177_vm11, %v169_v34, 0.0  ;;  %v205_v39 = vsel %vm177_vm11, %v196_v35, 0.0  ;;  %v183_v51 = vsel %vm177_vm11, %v171_v37, 0.0  ;;  %v209_v54 = vsel %vm177_vm11, %v198_v40, 0.0  ;;  %v1213_v35 = vld [vmem:[#allocation5 + $0x40] sm:$0xff] }
  0xb9   :  { %v180_v41 = vadd.f32 %v179_v38, %v178_v33  ;;  %v206_v42 = vadd.f32 %v205_v39, %v204_v36  ;;  %v149_v44 = vpop.permute.xlu1 %148  ;;  %v146_v47 = vpop.permute.xlu0 %145 }
  0xba   :  { %vm164_vm14 = vcmp.eq.s32.totalorder %v149_v44, 1  ;;  %vm163_vm15 = vcmp.eq.s32.totalorder %v146_v47, 1  ;;  %v221_v47 = vld [vmem:[%s1480_s2] sm:$0xff]  ;;  %s1016_s2 = smov 64  }
  0xbb   :  { %v182_v52 = vadd.f32 %v181_v48, %v180_v41  ;;  %v208_v53 = vadd.f32 %v207_v49, %v206_v42  ;;  %v173_v55 = vsel %vm164_vm14, %v1171_v43, 0.0  ;;  %v172_v56 = vsel %vm163_vm15, %v1173_v45, 0.0 }
  0xbc   :  { %v199_v57 = vsel %vm163_vm15, %v1175_v46, 0.0  ;;  %v200_v59 = vsel %vm164_vm14, %v1179_v50, 0.0  ;;  %v185_v62 = vsel %vm177_vm11, %v172_v56, 0.0  ;;  %v187_v9 = vsel %vm177_vm11, %v173_v55, 0.0 }
  0xbd   :  { %v184_v60 = vadd.f32 %v183_v51, %v182_v52  ;;  %v210_v61 = vadd.f32 %v209_v54, %v208_v53  ;;  %v155_v63 = vpop.permute.xlu1 %154  ;;  %v152_v4 = vpop.permute.xlu0 %151  ;;  %v211_v5 = vsel %vm177_vm11, %v199_v57, 0.0  ;;  %v213_v10 = vsel %vm177_vm11, %v200_v59, 0.0  ;;  %v742_v51 = vld [vmem:[%s1484_s6] ss:$0 sm:$0xff] }
  0xbe   :  { %vm166_vm0 = vcmp.eq.s32.totalorder %v155_v63, 1  ;;  %vm165_vm1 = vcmp.eq.s32.totalorder %v152_v4, 1 }
  0xbf   :  { %v186_v7 = vadd.f32 %v185_v62, %v184_v60  ;;  %v212_v8 = vadd.f32 %v211_v5, %v210_v61  ;;  %v174_v13 = vsel %vm165_vm1, %v1188_v2, 0.0  ;;  %v201_v14 = vsel %vm165_vm1, %v1190_v3, 0.0 }
  0xc0   :  { %v175_v16 = vsel %vm166_vm0, %v1193_v6, 0.0  ;;  %v189_v26 = vsel %vm177_vm11, %v174_v13, 0.0  ;;  %v215_v28 = vsel %vm177_vm11, %v201_v14, 0.0  ;;  %v202_v29 = vsel %vm166_vm0, %v1199_v11, 0.0  ;;  %v346_v13 = vld [vmem:[#allocation8 + $0x18] sm:$0xff]  ;;  %v345_v14 = vld [vmem:[#allocation8 + $0x10] sm:$0xff] }
  0xc1   :  { %v188_v17 = vadd.f32 %v187_v9, %v186_v7  ;;  %v214_v19 = vadd.f32 %v213_v10, %v212_v8  ;;  %v158_v23 = vpop.permute.xlu0 %157  ;;  %v191_v34 = vsel %vm177_vm11, %v175_v16, 0.0  ;;  %v217_v37 = vsel %vm177_vm11, %v202_v29, 0.0  ;;  %v350_v7 = vld [vmem:[#allocation8 + $0x38] sm:$0xff]  ;;  %v349_v8 = vld [vmem:[#allocation8 + $0x30] sm:$0xff]  ;;  %v348_v9 = vld [vmem:[#allocation8 + $0x28] sm:$0xff] }
  0xc2   :  { %vm167_vm3 = vcmp.eq.s32.totalorder %v158_v23, 1  ;;  %780 = vmatpush3.msra.mxu1 %v350_v7  ;;  %v347_v10 = vld [vmem:[#allocation8 + $0x20] sm:$0xff] }
  0xc3   :  { %v190_v30 = vadd.f32 %v189_v26, %v188_v17  ;;  %v216_v32 = vadd.f32 %v215_v28, %v214_v19  ;;  %v176_v33 = vsel %vm167_vm3, %v1203_v15, 0.0  ;;  %v203_v41 = vsel %vm167_vm3, %v1213_v35, 0.0  ;;  %781 = vmatprep.subr.mxu1 %v1012_v12  ;;  %v344_v17 = vld [vmem:[#allocation8 + $0x8] sm:$0xff]  ;;  %v343_v19 = vld [vmem:[#allocation8] sm:$0xff] }
  0xc4   :  { %v193_v38 = vsel %vm177_vm11, %v176_v33, 0.0  ;;  %v219_v42 = vsel %vm177_vm11, %v203_v41, 0.0  ;;  %782 = vmatpush3.msra.mxu1 %v349_v8 }
  0xc5   :  { %v192_v36 = vadd.f32 %v191_v34, %v190_v30  ;;  %v218_v39 = vadd.f32 %v217_v37, %v216_v32  ;;  %783 = vmatprep.subr.mxu1 %v1012_v12  ;;  %v745_v30 = vld [vmem:[%s1486_s8] ss:$0 sm:$0xff]  ;;  %s1018_s8 = smov [#allocation14]  }
  0xc6   :  { %784 = vmatpush3.msra.mxu1 %v348_v9  ;;  %s717_s15 = sshll.u32 %s1018_s8, 4  ;;  %s718_s15 = int_to_ptr.vmem [resolvable:$true] %s717_s15 }
  0xc7   :  { %v1217_v40 = vadd.f32 %v193_v38, %v192_v36  ;;  %v1222_v44 = vadd.f32 %v219_v42, %v218_v39  ;;  %785 = vmatprep.subr.mxu1 %v1012_v12  ;;  %v471_v39 = vadd.s32 1, %v1116_v1  ;;  %s913_s16 = scalar_lea.vmem %s718_s15, 1152  ;;  %p918_p7 = scmp.lt.s32.totalorder %s718_s15, %s718_s15 }
  0xc8   :  { %786 = vmatpush3.msra.mxu1 %v347_v10  ;;  %p914_p6 = scmp.ne.s32.totalorder %s718_s15, %s913_s16  ;;  %p919_p8 = scmp.lt.s32.totalorder %s913_s16, %s913_s16 }
  0xc9   :  { %230 = vrot.lane.b32.xlu1 %v1217_v40, %s1014_s0  ;;  %787 = vmatprep.subr.mxu1 %v1012_v12  ;;  %vm472_vm7 = vcmp.eq.s32.totalorder %v471_v39, 0  ;;  %vm474_vm9 = vcmp.eq.s32.totalorder %v471_v39, 2  ;;  %vm475_vm10 = vcmp.eq.s32.totalorder %v471_v39, 3  ;;  %vm476_vm13 = vcmp.eq.s32.totalorder %v471_v39, 4 }
  0xca   :  { %788 = vmatpush3.msra.mxu1 %v346_v13  ;;  %vm477_vm14 = vcmp.eq.s32.totalorder %v471_v39, 5  ;;  %vm478_vm15 = vcmp.eq.s32.totalorder %v471_v39, 6  ;;  %vm479_vm0 = vcmp.eq.s32.totalorder %v471_v39, 7  ;;  %vm480_vm1 = vcmp.eq.s32.totalorder %v471_v39, 8  ;;  %p920_p9 = por %p919_p8, %p918_p7 }
  0xcb   :  { %789 = vmatprep.subr.mxu1 %v1012_v12  ;;  %vm473_vm2 = vcmp.eq.s32.totalorder %v471_v39, 1 }
  0xcc   :  { %790 = vmatpush3.msra.mxu1 %v345_v14  ;;  %p921_p10 = pnand %p920_p9, %p914_p6 }
  0xcd   :  { %323 = vrot.lane.b32.xlu1 %v1222_v44, %s1015_s7  ;;  %791 = vmatprep.subr.mxu1 %v1012_v12 }
  0xce   :  { %792 = vmatpush3.msra.mxu1 %v344_v17 }
  0xcf   :  { %793 = vmatprep.subr.mxu1 %v1012_v12 }
  0xd0   :  { %794 = vmatpush3.msra.mxu1 %v343_v19 }
 0x13b   :  { %v231_v48 = vpop.permute.xlu1 %230 }
 0x13c   :  { %v234_v49 = vsel %vm233_vm4, %v221_v47, %v231_v48 }
 0x13d   :  { %777 = vmatmul.mubr.msk.f32.vlgmr.msra.gmra.mxu0 %vm241_vm5, %v234_v49  ;;  %v481_v49 = vsel %vm472_vm7, 1, %v1011_v0 }
 0x13f   :  { %v324_v62 = vpop.permute.xlu1 %323 }
 0x1fd   :  { %v311_v52 = vpop.f32.mrf.mxu0 }
 0x1fe   :  { %v312_v53 = vadd.f32 %v742_v51, %v311_v52  ;;  %v483_v52 = vsel %vm474_vm9, 1, %v1011_v0 }
 0x1ff   :  { %v778_v54 = vpop.f32.mrf.mxu0 }
 0x200   :  { %817 = vtanh.f32 %v312_v53  ;;  %v744_v56 = vmul.f32 -1.442695, %v312_v53  ;;  %v484_v53 = vsel %vm475_vm10, 1, %v1011_v0  ;;  %v485_v54 = vsel %vm476_vm13, 1, %v1011_v0 }
 0x202   :  { %819 = vpow2.f32 %v744_v56  ;;  %v487_v56 = vsel %vm478_vm15, 1, %v1011_v0 }
 0x20d   :  { %v818_v55 = vpop.eup %817 }
 0x20e   :  { %328 = vrot.lane.b32.xlu0 %v818_v55, %s1015_s7  ;;  %v486_v55 = vsel %vm477_vm14, 1, %v1011_v0 }
 0x20f   :  { %v820_v57 = vpop.eup %819 }
 0x210   :  { %v318_v58 = vadd.f32 1.0, %v820_v57  ;;  %v488_v57 = vsel %vm479_vm0, 1, %v1011_v0 }
 0x212   :  { %821 = vrcp.f32 %v318_v58  ;;  %v489_v58 = vsel %vm480_vm1, 1, %v1011_v0 }
 0x21f   :  { %v822_v59 = vpop.eup %821 }
 0x220   :  { %v326_v63 = vmul.f32 %v822_v59, %v324_v62 }
 0x280   :  { %v329_v60 = vpop.permute.xlu0 %328 }
 0x281   :  { %v331_v61 = vmul.f32 %v822_v59, %v329_v60 }
 0x283   :  { %333 = vrot.lane.b32.xlu0 %v331_v61, %s1015_s7 }
 0x2f5   :  { %v334_v4 = vpop.permute.xlu0 %333 }
 0x2f6   :  { %v1234_v5 = vadd.f32 %v334_v4, %v326_v63  ;;  %v482_v63 = vsel %vm473_vm2, 1, %v1011_v0 }
 0x2f8   :  { %823 = vtanh.f32 %v1234_v5 }
 0x305   :  { %v824_v16 = vpop.eup %823 }
 0x306   :  { %339 = vrot.lane.b32.xlu1 %v824_v16, %s1015_s7 }
 0x378   :  { %v340_v23 = vpop.permute.xlu1 %339 }
 0x379   :  { %v342_v26 = vmul.f32 %v822_v59, %v340_v23 }
 0x37b   :  { %353 = vrot.lane.b32.xlu0 %v342_v26, %s1016_s2 }
 0x3ed   :  { %v1245_v28 = vpop.permute.xlu0 %353 }
 0x3ee   :  { %v357_v29 = vsel %vm356_vm6, %v1245_v28, %v1217_v40  ;;  %v95_v40 = vld [vmem:[%s1479_s1] sm:$0xff]  ;;  %s1017_s1 = smov 96  }
 0x3ef   :  { %796 = vmatmul.mubr.msk.f32.vlgmr.msra.gmra.mxu1 %vm177_vm11, %v357_v29  ;;  %v1263_v48 = vadd.s32 %v95_v40, %v1116_v1 }
 0x3f1   :  { %vm563_vm8 = vcmp.eq.s32.totalorder %v1263_v48, 0  ;;  %vm566_vm12 = vcmp.eq.s32.totalorder %v1263_v48, 3  ;;  %vm564_vm3 = vcmp.eq.s32.totalorder %v1263_v48, 1  ;;  %vm565_vm4 = vcmp.eq.s32.totalorder %v1263_v48, 2 }
 0x3f2   :  { %v572_v51 = vsel %vm563_vm8, 1, %v1011_v0  ;;  %v575_v1 = vsel %vm566_vm12, 1, %v1011_v0  ;;  %v573_v4 = vsel %vm564_vm3, 1, %v1011_v0  ;;  %v574_v7 = vsel %vm565_vm4, 1, %v1011_v0 }
 0x3f3   :  { %vm567_vm5 = vcmp.eq.s32.totalorder %v1263_v48, 4  ;;  %vm568_vm7 = vcmp.eq.s32.totalorder %v1263_v48, 5  ;;  %vm569_vm8 = vcmp.eq.s32.totalorder %v1263_v48, 6  ;;  %vm570_vm9 = vcmp.eq.s32.totalorder %v1263_v48, 7 }
 0x3f4   :  { %v577_v8 = vsel %vm568_vm7, 1, %v1011_v0  ;;  %v578_v23 = vsel %vm569_vm8, 1, %v1011_v0  ;;  %v579_v26 = vsel %vm570_vm9, 1, %v1011_v0  ;;  %vm571_vm10 = vcmp.eq.s32.totalorder %v1263_v48, 8 }
 0x3f5   :  { %vm626_vm4 = vcmask 523520  }
 0x4af   :  { %v433_v12 = vpop.f32.mrf.mxu1 }
 0x4b0   :  { %v434_v32 = vadd.f32 %v745_v30, %v433_v12  ;;  %v580_v30 = vsel %vm571_vm10, 1, %v1011_v0 }
 0x4b1   :  { %v797_v33 = vpop.f32.mrf.mxu1 }
 0x4b2   :  { %825 = vtanh.f32 %v434_v32  ;;  %v747_v36 = vmul.f32 -1.442695, %v434_v32 }
 0x4b4   :  { %827 = vpow2.f32 %v747_v36 }
 0x4bf   :  { %v826_v34 = vpop.eup %825 }
 0x4c0   :  { %446 = vrot.lane.b32.xlu1 %v826_v34, %s1015_s7 }
 0x4c1   :  { %v828_v37 = vpop.eup %827 }
 0x4c2   :  { %v440_v38 = vadd.f32 1.0, %v828_v37 }
 0x4c4   :  { %829 = vrcp.f32 %v440_v38 }
 0x4d1   :  { %v1259_v41 = vpop.eup %829 }
 0x4d2   :  { %v444_v59 = vmul.f32 %v1259_v41, %v1222_v44  ;;  %v576_v44 = vsel %vm567_vm5, 1, %v1011_v0 }
 0x532   :  { %v447_v42 = vpop.permute.xlu1 %446 }
 0x533   :  { %v449_v47 = vmul.f32 %v1259_v41, %v447_v42 }
 0x535   :  { %451 = vrot.lane.b32.xlu0 %v449_v47, %s1015_s7 }
 0x539   :  { %491 = vperm.xlu0 %815, %v481_v49  }
 0x53d   :  { %582 = vperm.xlu0 %815, %v572_v51  }
 0x541   :  { %497 = vperm.xlu0 %815, %v483_v52  }
 0x545   :  { %500 = vperm.xlu0 %815, %v484_v53  }
 0x549   :  { %591 = vperm.xlu0 %815, %v575_v1  }
 0x54d   :  { %503 = vperm.xlu0 %815, %v485_v54  }
 0x551   :  { %506 = vperm.xlu0 %815, %v486_v55  }
 0x555   :  { %509 = vperm.xlu0 %815, %v487_v56  }
 0x559   :  { %512 = vperm.xlu0 %815, %v488_v57  }
 0x55d   :  { %515 = vperm.xlu0 %815, %v489_v58  }
 0x5a7   :  { %v452_v60 = vpop.permute.xlu0 %451 }
 0x5a8   :  { %v454_v61 = vadd.f32 %v452_v60, %v444_v59 }
 0x5aa   :  { %831 = vtanh.f32 %v454_v61 }
 0x5b4   :  { %v1292_v9 = vpop.permute.xlu0 %491 }
 0x5b5   :  { %vm517_vm12 = vcmp.eq.s32.totalorder %v1292_v9, 1 }
 0x5b7   :  { %v832_v62 = vpop.eup %831 }
 0x5b8   :  { %457 = vrot.lane.b32.xlu1 %v832_v62, %s1015_s7  ;;  %v1294_v10 = vpop.permute.xlu0 %582 }
 0x5b9   :  { %vm1491_vm13 = vcmp.eq.s32.totalorder %v1294_v10, 1 }
 0x5bc   :  { %494 = vperm.xlu1 %816, %v482_v63   ;;  %v1296_v13 = vpop.permute.xlu0 %497 }
 0x5bd   :  { %vm519_vm14 = vcmp.eq.s32.totalorder %v1296_v13, 1 }
 0x5c0   :  { %585 = vperm.xlu1 %816, %v573_v4   ;;  %v1298_v14 = vpop.permute.xlu0 %500 }
 0x5c1   :  { %vm520_vm15 = vcmp.eq.s32.totalorder %v1298_v14, 1 }
 0x5c4   :  { %588 = vperm.xlu1 %816, %v574_v7   ;;  %v1300_v16 = vpop.permute.xlu0 %591 }
 0x5c5   :  { %vm611_vm0 = vcmp.eq.s32.totalorder %v1300_v16, 1 }
 0x5c8   :  { %467 = vrot.lane.b32.xlu1 %v1234_v5, %s1017_s1  ;;  %v1304_v19 = vpop.permute.xlu0 %503 }
 0x5c9   :  { %vm521_vm1 = vcmp.eq.s32.totalorder %v1304_v19, 1 }
 0x5cc   :  { %594 = vperm.xlu1 %816, %v576_v44   ;;  %v1310_v29 = vpop.permute.xlu0 %506 }
 0x5cd   :  { %vm522_vm2 = vcmp.eq.s32.totalorder %v1310_v29, 1 }
 0x5d0   :  { %597 = vperm.xlu1 %816, %v577_v8   ;;  %v1316_v32 = vpop.permute.xlu0 %509 }
 0x5d1   :  { %vm523_vm3 = vcmp.eq.s32.totalorder %v1316_v32, 1 }
 0x5d4   :  { %v1320_v34 = vpop.permute.xlu0 %512 }
 0x5d5   :  { %vm1492_vm9 = vcmp.eq.s32.totalorder %v1320_v34, 1 }
 0x5d8   :  { %v1336_v38 = vpop.permute.xlu0 %515 }
 0x5d9   :  { %vm525_vm10 = vcmp.eq.s32.totalorder %v1336_v38, 1 }
 0x62a   :  { %v458_v17 = vpop.permute.xlu1 %457 }
 0x62b   :  { %v460_v5 = vmul.f32 %v1259_v41, %v458_v17 }
 0x62d   :  { %462 = vrot.lane.b32.xlu1 %v460_v5, %s1017_s1 }
 0x631   :  { %600 = vperm.xlu1 %816, %v578_v23  }
 0x635   :  { %603 = vperm.xlu1 %816, %v579_v26  }
 0x637   :  { %v1314_v12 = vpop.permute.xlu1 %494 }
 0x638   :  { %vm518_vm5 = vcmp.eq.s32.totalorder %v1314_v12, 1 }
 0x639   :  { %606 = vperm.xlu1 %816, %v580_v30  }
 0x63b   :  { %v1318_v33 = vpop.permute.xlu1 %585 }
 0x63c   :  { %vm609_vm7 = vcmp.eq.s32.totalorder %v1318_v33, 1 }
 0x63f   :  { %v1322_v36 = vpop.permute.xlu1 %588 }
 0x640   :  { %vm610_vm8 = vcmp.eq.s32.totalorder %v1322_v36, 1 }
 0x643   :  { %v468_v0 = vpop.permute.xlu1 %467 }
 0x644   :  { %v470_v37 = vsel %vm356_vm6, %v468_v0, %v454_v61 }
 0x645   :  { %v535_v39 = vsel %vm517_vm12, %v470_v37, %v1145_v20  ;;  %v536_v40 = vsel %vm518_vm5, %v470_v37, %v1154_v25  ;;  %v537_v41 = vsel %vm519_vm14, %v470_v37, %v1149_v22  ;;  %v538_v42 = vsel %vm520_vm15, %v470_v37, %v1160_v31 }
 0x646   :  { %v539_v47 = vsel %vm521_vm1, %v470_v37, %v1175_v46  ;;  %553 = vst.msk [vmem:[#allocation14] sm:$0xff] %vm177_vm11, %v535_v39  ;;  %554 = vst.msk [vmem:[#allocation14 + $0x8] sm:$0xff] %vm177_vm11, %v536_v40  ;;  %v649_v20 = vsel %vm1491_vm13, %v535_v39, 0.0  ;;  %v650_v22 = vsel %vm609_vm7, %v536_v40, 0.0  ;;  %v651_v25 = vsel %vm610_vm8, %v537_v41, 0.0 }
 0x647   :  { %555 = vst.msk [vmem:[#allocation14 + $0x10] sm:$0xff] %vm177_vm11, %v537_v41  ;;  %556 = vst.msk [vmem:[#allocation14 + $0x18] sm:$0xff] %vm177_vm11, %v538_v42  ;;  %v652_v31 = vsel %vm611_vm0, %v538_v42, 0.0  ;;  %v658_v46 = vsel %vm626_vm4, %v649_v20, 0.0  ;;  %v659_v48 = vsel %vm626_vm4, %v650_v22, 0.0  ;;  %v595_v49 = vpop.permute.xlu1 %594  ;;  %v540_v52 = vsel %vm522_vm2, %v470_v37, %v1179_v50 }
 0x648   :  { %557 = vst.msk [vmem:[#allocation14 + $0x20] sm:$0xff] %vm177_vm11, %v539_v47  ;;  %v660_v51 = vadd.f32 %v659_v48, %v658_v46  ;;  %vm612_vm13 = vcmp.eq.s32.totalorder %v595_v49, 1  ;;  %v661_v53 = vsel %vm626_vm4, %v651_v25, 0.0  ;;  %558 = vst.msk [vmem:[#allocation14 + $0x28] sm:$0xff] %vm177_vm11, %v540_v52  ;;  %v541_v1 = vsel %vm523_vm3, %v470_v37, %v1190_v3 }
 0x649   :  { %v542_v54 = vsel %vm1492_vm9, %v470_v37, %v1199_v11  ;;  %v1384_v55 = vsel %vm525_vm10, %v470_v37, %v1213_v35  ;;  %v653_v50 = vsel %vm612_vm13, %v539_v47, 0.0  ;;  %559 = vst.msk [vmem:[#allocation14 + $0x30] sm:$0xff] %vm177_vm11, %v541_v1  ;;  %v663_v3 = vsel %vm626_vm4, %v652_v31, 0.0 }
 0x64a   :  { %v662_v56 = vadd.f32 %v661_v53, %v660_v51  ;;  %560 = vst.msk [vmem:[#allocation14 + $0x38] sm:$0xff] %vm177_vm11, %v542_v54  ;;  %561 = vst.msk [vmem:[#allocation14 + $0x40] sm:$0xff] %vm177_vm11, %v1384_v55  ;;  %v665_v11 = vsel %vm626_vm4, %v653_v50, 0.0 }
 0x64b   :  { %v598_v57 = vpop.permute.xlu1 %597 }
 0x64c   :  { %v664_v58 = vadd.f32 %v663_v3, %v662_v56  ;;  %vm613_vm9 = vcmp.eq.s32.totalorder %v598_v57, 1 }
 0x64d   :  { %v654_v35 = vsel %vm613_vm9, %v540_v52, 0.0 }
 0x64e   :  { %v666_v59 = vadd.f32 %v665_v11, %v664_v58  ;;  %v667_v60 = vsel %vm626_vm4, %v654_v35, 0.0 }
 0x650   :  { %v668_v61 = vadd.f32 %v667_v60, %v666_v59 }
 0x69f   :  { %v463_v62 = vpop.permute.xlu1 %462 }
 0x6a0   :  { %v465_v63 = vsel %vm356_vm6, %v1245_v28, %v463_v62 }
 0x6a1   :  { %v526_v4 = vsel %vm517_vm12, %v465_v63, %v1143_v18  ;;  %v527_v7 = vsel %vm518_vm5, %v465_v63, %v1152_v24  ;;  %v528_v44 = vsel %vm519_vm14, %v465_v63, %v1147_v21  ;;  %v529_v8 = vsel %vm520_vm15, %v465_v63, %v1157_v27 }
 0x6a2   :  { %v530_v28 = vsel %vm521_vm1, %v465_v63, %v1173_v45  ;;  %v531_v18 = vsel %vm522_vm2, %v465_v63, %v1171_v43  ;;  %v532_v24 = vsel %vm523_vm3, %v465_v63, %v1188_v2  ;;  %544 = vst.msk [vmem:[#allocation13] sm:$0xff] %vm177_vm11, %v526_v4  ;;  %545 = vst.msk [vmem:[#allocation13 + $0x8] sm:$0xff] %vm177_vm11, %v527_v7  ;;  %vm1493_vm12 = vcmp.eq.s32.totalorder %v1294_v10, 1 }
 0x6a3   :  { %546 = vst.msk [vmem:[#allocation13 + $0x10] sm:$0xff] %vm177_vm11, %v528_v44  ;;  %547 = vst.msk [vmem:[#allocation13 + $0x18] sm:$0xff] %vm177_vm11, %v529_v8  ;;  %v617_v21 = vsel %vm1493_vm12, %v526_v4, 0.0  ;;  %v618_v27 = vsel %vm609_vm7, %v527_v7, 0.0  ;;  %v619_v43 = vsel %vm610_vm8, %v528_v44, 0.0  ;;  %v620_v9 = vsel %vm611_vm0, %v529_v8, 0.0 }
 0x6a4   :  { %548 = vst.msk [vmem:[#allocation13 + $0x20] sm:$0xff] %vm177_vm11, %v530_v28  ;;  %549 = vst.msk [vmem:[#allocation13 + $0x28] sm:$0xff] %vm177_vm11, %v531_v18  ;;  %v627_v45 = vsel %vm626_vm4, %v617_v21, 0.0  ;;  %v628_v2 = vsel %vm626_vm4, %v618_v27, 0.0  ;;  %v630_v13 = vsel %vm626_vm4, %v619_v43, 0.0  ;;  %vm1494_vm14 = vcmp.eq.s32.totalorder %v1320_v34, 1 }
 0x6a5   :  { %550 = vst.msk [vmem:[#allocation13 + $0x30] sm:$0xff] %vm177_vm11, %v532_v24  ;;  %v629_v10 = vadd.f32 %v628_v2, %v627_v45  ;;  %v533_v14 = vsel %vm1494_vm14, %v465_v63, %v1193_v6  ;;  %v534_v17 = vsel %vm525_vm10, %v465_v63, %v1203_v15  ;;  %v632_v19 = vsel %vm626_vm4, %v620_v9, 0.0 }
 0x6a6   :  { %551 = vst.msk [vmem:[#allocation13 + $0x38] sm:$0xff] %vm177_vm11, %v533_v14  ;;  %552 = vst.msk [vmem:[#allocation13 + $0x40] sm:$0xff] %vm177_vm11, %v534_v17  ;;  %v621_v23 = vsel %vm612_vm13, %v530_v28, 0.0  ;;  %v622_v6 = vsel %vm613_vm9, %v531_v18, 0.0 }
 0x6a7   :  { %v631_v5 = vadd.f32 %v630_v13, %v629_v10  ;;  %v634_v29 = vsel %vm626_vm4, %v621_v23, 0.0  ;;  %v636_v33 = vsel %vm626_vm4, %v622_v6, 0.0 }
 0x6a9   :  { %v633_v16 = vadd.f32 %v632_v19, %v631_v5 }
 0x6ab   :  { %v635_v30 = vadd.f32 %v634_v29, %v633_v16 }
 0x6ac   :  { %v601_v26 = vpop.permute.xlu1 %600 }
 0x6ad   :  { %vm614_vm15 = vcmp.eq.s32.totalorder %v601_v26, 1  ;;  %v637_v0 = vadd.f32 %v636_v33, %v635_v30 }
 0x6ae   :  { %v623_v12 = vsel %vm614_vm15, %v532_v24, 0.0  ;;  %v655_v32 = vsel %vm614_vm15, %v541_v1, 0.0 }
 0x6af   :  { %v638_v34 = vsel %vm626_vm4, %v623_v12, 0.0  ;;  %v669_v36 = vsel %vm626_vm4, %v655_v32, 0.0 }
 0x6b0   :  { %v604_v15 = vpop.permute.xlu1 %603  ;;  %v639_v41 = vadd.f32 %v638_v34, %v637_v0  ;;  %v670_v42 = vadd.f32 %v669_v36, %v668_v61 }
 0x6b1   :  { %vm615_vm11 = vcmp.eq.s32.totalorder %v604_v15, 1 }
 0x6b2   :  { %v624_v37 = vsel %vm615_vm11, %v533_v14, 0.0  ;;  %v656_v38 = vsel %vm615_vm11, %v542_v54, 0.0 }
 0x6b3   :  { %v640_v39 = vsel %vm626_vm4, %v624_v37, 0.0  ;;  %v671_v40 = vsel %vm626_vm4, %v656_v38, 0.0 }
 0x6b4   :  { %v607_v47 = vpop.permute.xlu1 %606 }
 0x6b5   :  { %924 = shalt.err (!%p921_p10)
}
 0x6b6   :  { %723 = dma.vmem_to_hbm [thread:$0]  %s718_s15, 1152, %s1490_s12, [#allocation15], %s1007_s26, %s1007_s26, %s1008_s27   ;;  %vm616_vm13 = vcmp.eq.s32.totalorder %v607_v47, 1  ;;  %v641_v20 = vadd.f32 %v640_v39, %v639_v41  ;;  %v672_v22 = vadd.f32 %v671_v40, %v670_v42 }
 0x6b7   :  { %v625_v25 = vsel %vm616_vm13, %v534_v17, 0.0  ;;  %v657_v31 = vsel %vm616_vm13, %v1384_v55, 0.0  ;;  %s1019_s4 = smov [#allocation11]   ;;  %s1020_s20 = smov [#allocation10]  }
 0x6b8   :  { %v642_v46 = vsel %vm626_vm4, %v625_v25, 0.0  ;;  %v673_v48 = vsel %vm626_vm4, %v657_v31, 0.0  ;;  %s696_s19 = sshll.u32 %s1019_s4, 4  ;;  %s686_s12 = sshll.u32 %s1020_s20, 4  ;;  %s697_s19 = int_to_ptr.vmem [resolvable:$true] %s696_s19  ;;  %s687_s12 = int_to_ptr.vmem [resolvable:$true] %s686_s12 }
 0x6b9   :  { %v643_v49 = vadd.f32 %v642_v46, %v641_v20  ;;  %v674_v51 = vadd.f32 %v673_v48, %v672_v22  ;;  %s1021_s3 = smov [#allocation13]   ;;  %s933_s22 = scalar_lea.vmem %s697_s19, 128 }
 0x6ba   :  { %s705_s21 = sshll.u32 %s1021_s3, 4  ;;  %p934_p11 = scmp.ne.s32.totalorder %s697_s19, %s933_s22  ;;  %s706_s21 = int_to_ptr.vmem [resolvable:$true] %s705_s21 }
 0x6bb   :  { %676 = vrot.lane.b32.xlu0 %v674_v51, %s1017_s1  ;;  %645 = vrot.lane.b32.xlu1 %v643_v49, %s1017_s1  ;;  %p938_p12 = scmp.lt.s32.totalorder %s697_s19, %s697_s19  ;;  %p939_p13 = scmp.lt.s32.totalorder %s933_s22, %s933_s22 }
 0x6bd   :  { %p940_p0 = por %p939_p13, %p938_p12 }
 0x6bf   :  { %p941_p1 = pnand %p940_p0, %p934_p11 }
 0x72d   :  { %v677_v52 = vpop.permute.xlu0 %676  ;;  %v646_v53 = vpop.permute.xlu1 %645 }
 0x72e   :  { %679 = vst.msk [vmem:[#allocation11] sm:$0xff] %vm356_vm6, %v677_v52  ;;  %648 = vst.msk [vmem:[#allocation10] sm:$0xff] %vm356_vm6, %v646_v53 }
 0x72f   :  { %944 = shalt.err (!%p941_p1)
}
 0x730   :  { %699 = dma.vmem_to_hbm [thread:$0]  %s697_s19, 128, %s1488_s10, [#allocation12]  }
 0x731   :  { %s953_s0 = scalar_lea.vmem %s687_s12, 128  ;;  %p958_p3 = scmp.lt.s32.totalorder %s687_s12, %s687_s12 }
 0x732   :  { %p954_p2 = scmp.ne.s32.totalorder %s687_s12, %s953_s0  ;;  %p959_p4 = scmp.lt.s32.totalorder %s953_s0, %s953_s0 }
 0x734   :  { %p960_p5 = por %p959_p4, %p958_p3 }
 0x736   :  { %p961_p6 = pnand %p960_p5, %p954_p2 }
 0x738   :  { %964 = shalt.err (!%p961_p6)
}
 0x739   :  { %689 = dma.vmem_to_hbm [thread:$0]  %s687_s12, 128, %s1487_s9, [#allocation4]  }
 0x73a   :  { %s973_s25 = scalar_lea.vmem %s706_s21, 1152  ;;  %p978_p8 = scmp.lt.s32.totalorder %s706_s21, %s706_s21 }
 0x73b   :  { %p974_p7 = scmp.ne.s32.totalorder %s706_s21, %s973_s25  ;;  %p979_p9 = scmp.lt.s32.totalorder %s973_s25, %s973_s25 }
 0x73d   :  { %p980_p10 = por %p979_p9, %p978_p8 }
 0x73f   :  { %p981_p11 = pnand %p980_p10, %p974_p7 }
 0x741   :  { %984 = shalt.err (!%p981_p11)
}
 0x742   :  { %711 = dma.vmem_to_hbm [thread:$0]  %s706_s21, 1152, %s1489_s11, [#allocation12], %s1007_s26, %s1007_s26, %s1008_s27  }
 0x743   :  { %999 = dma.done.wait [#allocation4], 128  }
 0x744   :  { %1000 = vsyncadd [#allocation4], 4294967168 }
 0x745   :  { %1001 = dma.done.wait [#allocation12], 1280  }
 0x746   :  { %1002 = vsyncadd [#allocation12], 4294966016 }
 0x747   :  { %1003 = dma.done.wait [#allocation15], 1152  }
 0x748   :  { %1004 = vsyncadd [#allocation15], 4294966144 }
 0x749   :  { %736 = vsyncpa [#allocation3], 1 }
 0x74a   :  { %737 = vsyncpa [#allocation6], 1 }
 0x74b   :  { %738 = vsyncpa [#allocation9], 1 }
 0x74c   :  { %739 = vsyncpa [#allocation4], 1 }
 0x74d   :  { %740 = vsyncpa [#allocation12], 1 }
 0x74e   :  { %741 = vsyncpa [#allocation15], 1 }

</bundles_post_ra>
